<compile_context>
chip_gen: v7x
topology: tpu7x:2x2x1
jax: 0.10.0
libtpu: 0.0.40
codegen_flags: <defaults>
</compile_context>

<pallas_src>
import functools

import jax
import jax.numpy as jnp
from jax.experimental import pallas as pl
from jax.experimental.pallas import tpu as pltpu


def _cdiv(a, b):
    return (a + b - 1) // b


def _cam_mse_kernel(adv_ref, org_ref, w1t_ref, w2_ref, out_ref, *,
                    nb, c, k, cw, n_chunks, tw, s_valid, need_mask,
                    use_mxu, mxu_bf16):
    """One grid step: nb images x one spatial tile of tw columns.

    adv_ref / org_ref : (nb, C, tw) channel-major tiles, spatial on lanes
    w1t_ref           : (K, C)  transposed 1x1-conv weight (SMEM or VMEM)
    w2_ref            : (K, 1)  class-combination weight   (SMEM or VMEM)
    out_ref           : (1, 1, nb, cw) elementwise partial sum of (mask diff)^2
    """
    j = pl.program_id(1)

    if use_mxu:
        w1t = w1t_ref[...]                       # (K, C) f32, VMEM
        w2v = w2_ref[...]                        # (K, 1) f32
        w1t_op = w1t.astype(jnp.bfloat16) if mxu_bf16 else w1t
    else:
        # Hoisted SMEM scalar reads: once per grid step, not per chunk.
        w1_s = [[w1t_ref[ki, ci] for ci in range(c)] for ki in range(k)]
        w2_s = [w2_ref[ki, 0] for ki in range(k)]

    def cam_diff(a, o):
        """a, o: (nb, C, cw) chunk (input dtype) -> (nb, cw) f32 mask diff."""
        if use_mxu:
            rows = []
            for b in range(nb):                  # nb is small & static
                ab, ob = a[b], o[b]              # (C, cw)
                if mxu_bf16:
                    ab = ab.astype(jnp.bfloat16)
                    ob = ob.astype(jnp.bfloat16)
                fa = jnp.maximum(
                    jnp.dot(w1t_op, ab, preferred_element_type=jnp.float32), 0.0)
                fo = jnp.maximum(
                    jnp.dot(w1t_op, ob, preferred_element_type=jnp.float32), 0.0)
                # Class mix is linear -> mix the difference (VPU + sublane sum).
                rows.append(jnp.sum((fa - fo) * w2v, axis=0, keepdims=True))
            return rows[0] if nb == 1 else jnp.concatenate(rows, axis=0)

        # VPU path: unrolled scalar-broadcast channel accumulation.
        af = a.astype(jnp.float32)
        of = o.astype(jnp.float32)
        a_ch = [af[:, ci, :] for ci in range(c)]          # each (nb, cw)
        o_ch = [of[:, ci, :] for ci in range(c)]
        d = jnp.zeros((nb, cw), jnp.float32)
        for ki in range(k):
            fa = jnp.zeros((nb, cw), jnp.float32)
            fo = jnp.zeros((nb, cw), jnp.float32)
            for ci in range(c):
                fa = fa + w1_s[ki][ci] * a_ch[ci]
                fo = fo + w1_s[ki][ci] * o_ch[ci]
            d = d + w2_s[ki] * (jnp.maximum(fa, 0.0) - jnp.maximum(fo, 0.0))
        return d

    def tile_sum(masked):
        def body(ci, acc):
            off = pl.multiple_of(ci * cw, cw)
            a = adv_ref[:, :, pl.ds(off, cw)]             # (nb, C, cw)
            o = org_ref[:, :, pl.ds(off, cw)]
            d = cam_diff(a, o)                            # (nb, cw) f32
            if masked:
                col = (j * tw + off
                       + jax.lax.broadcasted_iota(jnp.int32, (nb, cw), 1))
                d = jnp.where(col < s_valid, d, 0.0)      # zero ragged tail
            return acc + d * d
        return jax.lax.fori_loop(0, n_chunks, body,
                                 jnp.zeros((nb, cw), jnp.float32), unroll=True)

    if need_mask:
        last = pl.num_programs(1) - 1

        @pl.when(j < last)
        def _():
            out_ref[0, 0] = tile_sum(masked=False)

        @pl.when(j == last)
        def _():
            out_ref[0, 0] = tile_sum(masked=True)
    else:
        out_ref[0, 0] = tile_sum(masked=False)


def cam_criteria_pallas(adv_nchw, org_nchw, w1, w2, *,
                        chunk_lanes=512,
                        vmem_input_budget=16 * 1024 * 1024,
                        step_bytes_target=2 * 1024 * 1024,
                        mxu_bf16=True):
    """adv_nchw, org_nchw: (N, C, H, W).  w1: (C, K).  w2: (K, 1).

    Returns the scalar MSE between the two CAM masks.
    """
    n, c, h, w = adv_nchw.shape
    k = w1.shape[1]
    s = h * w
    itemsize = jnp.dtype(adv_nchw.dtype).itemsize

    # Channel-major views: NCHW -> (N, C, H*W).  Pure metadata reshape -- no
    # transpose, no pad, no dtype cast (HBM is streamed at the native dtype).
    adv3d = adv_nchw.reshape(n, c, s)
    org3d = org_nchw.reshape(n, c, s)

    # Tiny weights, f32, transposed once so the conv is a channel contraction.
    w1t = jnp.transpose(w1).astype(jnp.float32)           # (K, C)
    w2f = w2.astype(jnp.float32)                          # (K, 1)

    # Tiny C*K -> VPU scalar-fma path (keeps the kernel memory-bound); larger
    # channel contractions -> MXU dot with bf16 operands / f32 accumulation.
    use_mxu = (c * k) > 256

    # --- spatial tiling: big DMA tile (tw), vreg-resident compute chunk (cw) ---
    max_cols = max(128, vmem_input_budget // (4 * c * itemsize))  # nb*tw cap
    if s <= chunk_lanes:
        cw = tw = s
        n_chunks, sb, need_mask = 1, 1, False
    else:
        cw = chunk_lanes                                   # multiple of 128
        tw_cap = max(cw, min(8192, (max_cols // cw) * cw))
        tw = min(tw_cap, max(cw, (s // cw) * cw))          # never exceeds s
        n_chunks = tw // cw
        sb = _cdiv(s, tw)
        need_mask = (s % tw) != 0

    # --- batch images per grid step to amortize the ~0.35us/step overhead ---
    nb_cap = max(1, max_cols // tw)
    nb_tgt = max(1, step_bytes_target // max(1, 2 * c * tw * itemsize))
    nb_want = max(1, min(n, nb_cap, nb_tgt))
    nb = max(d for d in range(1, nb_want + 1) if n % d == 0)
    n_blocks = n // nb

    kernel = functools.partial(
        _cam_mse_kernel, nb=nb, c=c, k=k, cw=cw, n_chunks=n_chunks, tw=tw,
        s_valid=s, need_mask=need_mask, use_mxu=use_mxu, mxu_bf16=mxu_bf16)

    data_spec = pl.BlockSpec((nb, c, tw), lambda i, j: (i, 0, j))
    if use_mxu:
        w1_spec = pl.BlockSpec((k, c), lambda i, j: (0, 0))     # VMEM, resident
        w2_spec = pl.BlockSpec((k, 1), lambda i, j: (0, 0))
    else:
        w1_spec = pl.BlockSpec(memory_space=pltpu.MemorySpace.SMEM)
        w2_spec = pl.BlockSpec(memory_space=pltpu.MemorySpace.SMEM)

    partials = pl.pallas_call(
        kernel,
        out_shape=jax.ShapeDtypeStruct((n_blocks, sb, nb, cw), jnp.float32),
        grid_spec=pltpu.PrefetchScalarGridSpec(
            num_scalar_prefetch=0,
            grid=(n_blocks, sb),
            in_specs=[data_spec, data_spec, w1_spec, w2_spec],
            out_specs=pl.BlockSpec((1, 1, nb, cw), lambda i, j: (i, j, 0, 0)),
        ),
        compiler_params=pltpu.CompilerParams(
            # Independent per-block partial sums -> fully parallel grid
            # (both v7x TensorCores can stream; neutral on v5e/v6e).
            dimension_semantics=("parallel", "parallel"),
            vmem_limit_bytes=32 * 1024 * 1024,
        ),
    )(adv3d, org3d, w1t, w2f)

    # Tiny final reduction + mean in JAX.
    total = jnp.sum(partials)
    return total / jnp.float32(n * s)


def _reference(adv_nchw, org_nchw, w1, w2):
    """Pure-JAX reference mirroring the PyTorch semantics."""
    def cam(x):
        xr = jnp.transpose(x, (0, 2, 3, 1))                     # NHWC
        f = jnp.maximum(jnp.einsum("nhwc,ck->nhwk", xr, w1), 0.0)
        return jnp.einsum("nhwk,kq->nhwq", f, w2)               # (N,H,W,1)
    ma = cam(adv_nchw)
    mo = cam(org_nchw)
    return jnp.mean((ma - mo) ** 2)


if __name__ == "__main__":
    key = jax.random.PRNGKey(0)

    def run_case(n, c, h, w, k, rtol=1e-3, atol=1e-6):
        ks = jax.random.split(jax.random.fold_in(key, n * 1000 + c * 100 + h), 4)
        adv = jax.random.normal(ks[0], (n, c, h, w), dtype=jnp.float32)
        org = jax.random.normal(ks[1], (n, c, h, w), dtype=jnp.float32)
        w1 = 0.1 * jax.random.normal(ks[2], (c, k), dtype=jnp.float32)
        w2 = 0.1 * jax.random.normal(ks[3], (k, 1), dtype=jnp.float32)
        out = jax.block_until_ready(cam_criteria_pallas(adv, org, w1, w2))
        ref = _reference(adv, org, w1, w2)
        assert jnp.allclose(out, ref, rtol=rtol, atol=atol), (
            (n, c, h, w, k), out, ref)

    # Main config (NCHW, matching PyTorch conv conventions): VPU path, 1 tile.
    run_case(2, 4, 16, 16, 8)
    # Chunked spatial tiles + ragged masked tail (VPU path, pl.when split).
    run_case(2, 4, 33, 33, 8)
    # Larger channel contraction -> MXU path (bf16 operands, f32 accumulate);
    # slightly looser tolerance for the bf16 operand rounding.
    run_case(2, 32, 16, 16, 16, rtol=2e-2, atol=1e-5)

    print("KERNEL_OK")
</pallas_src>

<mosaic_0001>
module attributes {stable_mosaic.version = 11 : i64} {
  func.func @_cam_mse_kernel(%arg0: i32, %arg1: i32, %arg2: memref<2x4x256xf32, #tpu.memory_space<vmem>>, %arg3: memref<2x4x256xf32, #tpu.memory_space<vmem>>, %arg4: memref<8x4xf32, #tpu.memory_space<smem>>, %arg5: memref<8x1xf32, #tpu.memory_space<smem>>, %arg6: memref<1x1x2x256xf32, #tpu.memory_space<vmem>>) attributes {dimension_semantics = [#tpu.dimension_semantics<parallel>, #tpu.dimension_semantics<parallel>], iteration_bounds = array<i64: 1, 1>, scalar_prefetch = 0 : i64, scratch_operands = 0 : i64, tpu.core_type = #tpu.core_type<tc>, window_params = [{transform_indices = @transform_0, window_bounds = array<i64: 2, 4, 256>}, {transform_indices = @transform_1, window_bounds = array<i64: 2, 4, 256>}, {transform_indices = @transform_2, window_bounds = array<i64: 8, 4>}, {transform_indices = @transform_3, window_bounds = array<i64: 8, 1>}, {transform_indices = @transform_4, window_bounds = array<i64: 1, 1, 2, 256>}]} {
    %c0 = arith.constant 0 : index
    %c0_0 = arith.constant 0 : index
    %0 = memref.load %arg4[%c0, %c0_0] : memref<8x4xf32, #tpu.memory_space<smem>>
    %c0_1 = arith.constant 0 : index
    %c1 = arith.constant 1 : index
    %1 = memref.load %arg4[%c0_1, %c1] : memref<8x4xf32, #tpu.memory_space<smem>>
    %c0_2 = arith.constant 0 : index
    %c2 = arith.constant 2 : index
    %2 = memref.load %arg4[%c0_2, %c2] : memref<8x4xf32, #tpu.memory_space<smem>>
    %c0_3 = arith.constant 0 : index
    %c3 = arith.constant 3 : index
    %3 = memref.load %arg4[%c0_3, %c3] : memref<8x4xf32, #tpu.memory_space<smem>>
    %c1_4 = arith.constant 1 : index
    %c0_5 = arith.constant 0 : index
    %4 = memref.load %arg4[%c1_4, %c0_5] : memref<8x4xf32, #tpu.memory_space<smem>>
    %c1_6 = arith.constant 1 : index
    %c1_7 = arith.constant 1 : index
    %5 = memref.load %arg4[%c1_6, %c1_7] : memref<8x4xf32, #tpu.memory_space<smem>>
    %c1_8 = arith.constant 1 : index
    %c2_9 = arith.constant 2 : index
    %6 = memref.load %arg4[%c1_8, %c2_9] : memref<8x4xf32, #tpu.memory_space<smem>>
    %c1_10 = arith.constant 1 : index
    %c3_11 = arith.constant 3 : index
    %7 = memref.load %arg4[%c1_10, %c3_11] : memref<8x4xf32, #tpu.memory_space<smem>>
    %c2_12 = arith.constant 2 : index
    %c0_13 = arith.constant 0 : index
    %8 = memref.load %arg4[%c2_12, %c0_13] : memref<8x4xf32, #tpu.memory_space<smem>>
    %c2_14 = arith.constant 2 : index
    %c1_15 = arith.constant 1 : index
    %9 = memref.load %arg4[%c2_14, %c1_15] : memref<8x4xf32, #tpu.memory_space<smem>>
    %c2_16 = arith.constant 2 : index
    %c2_17 = arith.constant 2 : index
    %10 = memref.load %arg4[%c2_16, %c2_17] : memref<8x4xf32, #tpu.memory_space<smem>>
    %c2_18 = arith.constant 2 : index
    %c3_19 = arith.constant 3 : index
    %11 = memref.load %arg4[%c2_18, %c3_19] : memref<8x4xf32, #tpu.memory_space<smem>>
    %c3_20 = arith.constant 3 : index
    %c0_21 = arith.constant 0 : index
    %12 = memref.load %arg4[%c3_20, %c0_21] : memref<8x4xf32, #tpu.memory_space<smem>>
    %c3_22 = arith.constant 3 : index
    %c1_23 = arith.constant 1 : index
    %13 = memref.load %arg4[%c3_22, %c1_23] : memref<8x4xf32, #tpu.memory_space<smem>>
    %c3_24 = arith.constant 3 : index
    %c2_25 = arith.constant 2 : index
    %14 = memref.load %arg4[%c3_24, %c2_25] : memref<8x4xf32, #tpu.memory_space<smem>>
    %c3_26 = arith.constant 3 : index
    %c3_27 = arith.constant 3 : index
    %15 = memref.load %arg4[%c3_26, %c3_27] : memref<8x4xf32, #tpu.memory_space<smem>>
    %c4 = arith.constant 4 : index
    %c0_28 = arith.constant 0 : index
    %16 = memref.load %arg4[%c4, %c0_28] : memref<8x4xf32, #tpu.memory_space<smem>>
    %c4_29 = arith.constant 4 : index
    %c1_30 = arith.constant 1 : index
    %17 = memref.load %arg4[%c4_29, %c1_30] : memref<8x4xf32, #tpu.memory_space<smem>>
    %c4_31 = arith.constant 4 : index
    %c2_32 = arith.constant 2 : index
    %18 = memref.load %arg4[%c4_31, %c2_32] : memref<8x4xf32, #tpu.memory_space<smem>>
    %c4_33 = arith.constant 4 : index
    %c3_34 = arith.constant 3 : index
    %19 = memref.load %arg4[%c4_33, %c3_34] : memref<8x4xf32, #tpu.memory_space<smem>>
    %c5 = arith.constant 5 : index
    %c0_35 = arith.constant 0 : index
    %20 = memref.load %arg4[%c5, %c0_35] : memref<8x4xf32, #tpu.memory_space<smem>>
    %c5_36 = arith.constant 5 : index
    %c1_37 = arith.constant 1 : index
    %21 = memref.load %arg4[%c5_36, %c1_37] : memref<8x4xf32, #tpu.memory_space<smem>>
    %c5_38 = arith.constant 5 : index
    %c2_39 = arith.constant 2 : index
    %22 = memref.load %arg4[%c5_38, %c2_39] : memref<8x4xf32, #tpu.memory_space<smem>>
    %c5_40 = arith.constant 5 : index
    %c3_41 = arith.constant 3 : index
    %23 = memref.load %arg4[%c5_40, %c3_41] : memref<8x4xf32, #tpu.memory_space<smem>>
    %c6 = arith.constant 6 : index
    %c0_42 = arith.constant 0 : index
    %24 = memref.load %arg4[%c6, %c0_42] : memref<8x4xf32, #tpu.memory_space<smem>>
    %c6_43 = arith.constant 6 : index
    %c1_44 = arith.constant 1 : index
    %25 = memref.load %arg4[%c6_43, %c1_44] : memref<8x4xf32, #tpu.memory_space<smem>>
    %c6_45 = arith.constant 6 : index
    %c2_46 = arith.constant 2 : index
    %26 = memref.load %arg4[%c6_45, %c2_46] : memref<8x4xf32, #tpu.memory_space<smem>>
    %c6_47 = arith.constant 6 : index
    %c3_48 = arith.constant 3 : index
    %27 = memref.load %arg4[%c6_47, %c3_48] : memref<8x4xf32, #tpu.memory_space<smem>>
    %c7 = arith.constant 7 : index
    %c0_49 = arith.constant 0 : index
    %28 = memref.load %arg4[%c7, %c0_49] : memref<8x4xf32, #tpu.memory_space<smem>>
    %c7_50 = arith.constant 7 : index
    %c1_51 = arith.constant 1 : index
    %29 = memref.load %arg4[%c7_50, %c1_51] : memref<8x4xf32, #tpu.memory_space<smem>>
    %c7_52 = arith.constant 7 : index
    %c2_53 = arith.constant 2 : index
    %30 = memref.load %arg4[%c7_52, %c2_53] : memref<8x4xf32, #tpu.memory_space<smem>>
    %c7_54 = arith.constant 7 : index
    %c3_55 = arith.constant 3 : index
    %31 = memref.load %arg4[%c7_54, %c3_55] : memref<8x4xf32, #tpu.memory_space<smem>>
    %c0_56 = arith.constant 0 : index
    %c0_57 = arith.constant 0 : index
    %32 = memref.load %arg5[%c0_56, %c0_57] : memref<8x1xf32, #tpu.memory_space<smem>>
    %c1_58 = arith.constant 1 : index
    %c0_59 = arith.constant 0 : index
    %33 = memref.load %arg5[%c1_58, %c0_59] : memref<8x1xf32, #tpu.memory_space<smem>>
    %c2_60 = arith.constant 2 : index
    %c0_61 = arith.constant 0 : index
    %34 = memref.load %arg5[%c2_60, %c0_61] : memref<8x1xf32, #tpu.memory_space<smem>>
    %c3_62 = arith.constant 3 : index
    %c0_63 = arith.constant 0 : index
    %35 = memref.load %arg5[%c3_62, %c0_63] : memref<8x1xf32, #tpu.memory_space<smem>>
    %c4_64 = arith.constant 4 : index
    %c0_65 = arith.constant 0 : index
    %36 = memref.load %arg5[%c4_64, %c0_65] : memref<8x1xf32, #tpu.memory_space<smem>>
    %c5_66 = arith.constant 5 : index
    %c0_67 = arith.constant 0 : index
    %37 = memref.load %arg5[%c5_66, %c0_67] : memref<8x1xf32, #tpu.memory_space<smem>>
    %c6_68 = arith.constant 6 : index
    %c0_69 = arith.constant 0 : index
    %38 = memref.load %arg5[%c6_68, %c0_69] : memref<8x1xf32, #tpu.memory_space<smem>>
    %c7_70 = arith.constant 7 : index
    %c0_71 = arith.constant 0 : index
    %39 = memref.load %arg5[%c7_70, %c0_71] : memref<8x1xf32, #tpu.memory_space<smem>>
    %cst = arith.constant 0.000000e+00 : f32
    %40 = vector.broadcast %cst : f32 to vector<2x256xf32>
    %c0_i32 = arith.constant 0 : i32
    %c256_i32 = arith.constant 256 : i32
    %41 = arith.muli %c0_i32, %c256_i32 : i32
    %42 = tpu.assume_multiple %41, 256 : i32
    %c0_72 = arith.constant 0 : index
    %c0_73 = arith.constant 0 : index
    %43 = arith.index_cast %42 : i32 to index
    %44 = vector.load %arg2[%c0_72, %c0_73, %43] : memref<2x4x256xf32, #tpu.memory_space<vmem>>, vector<2x4x256xf32>
    %c0_74 = arith.constant 0 : index
    %c0_75 = arith.constant 0 : index
    %45 = arith.index_cast %42 : i32 to index
    %46 = vector.load %arg3[%c0_74, %c0_75, %45] : memref<2x4x256xf32, #tpu.memory_space<vmem>>, vector<2x4x256xf32>
    %47 = vector.extract_strided_slice %44 {offsets = [0, 0, 0], sizes = [2, 1, 256], strides = [1, 1, 1]} : vector<2x4x256xf32> to vector<2x1x256xf32>
    %48 = vector.shape_cast %47 : vector<2x1x256xf32> to vector<2x256xf32>
    %49 = vector.extract_strided_slice %44 {offsets = [0, 1, 0], sizes = [2, 1, 256], strides = [1, 1, 1]} : vector<2x4x256xf32> to vector<2x1x256xf32>
    %50 = vector.shape_cast %49 : vector<2x1x256xf32> to vector<2x256xf32>
    %51 = vector.extract_strided_slice %44 {offsets = [0, 2, 0], sizes = [2, 1, 256], strides = [1, 1, 1]} : vector<2x4x256xf32> to vector<2x1x256xf32>
    %52 = vector.shape_cast %51 : vector<2x1x256xf32> to vector<2x256xf32>
    %53 = vector.extract_strided_slice %44 {offsets = [0, 3, 0], sizes = [2, 1, 256], strides = [1, 1, 1]} : vector<2x4x256xf32> to vector<2x1x256xf32>
    %54 = vector.shape_cast %53 : vector<2x1x256xf32> to vector<2x256xf32>
    %55 = vector.extract_strided_slice %46 {offsets = [0, 0, 0], sizes = [2, 1, 256], strides = [1, 1, 1]} : vector<2x4x256xf32> to vector<2x1x256xf32>
    %56 = vector.shape_cast %55 : vector<2x1x256xf32> to vector<2x256xf32>
    %57 = vector.extract_strided_slice %46 {offsets = [0, 1, 0], sizes = [2, 1, 256], strides = [1, 1, 1]} : vector<2x4x256xf32> to vector<2x1x256xf32>
    %58 = vector.shape_cast %57 : vector<2x1x256xf32> to vector<2x256xf32>
    %59 = vector.extract_strided_slice %46 {offsets = [0, 2, 0], sizes = [2, 1, 256], strides = [1, 1, 1]} : vector<2x4x256xf32> to vector<2x1x256xf32>
    %60 = vector.shape_cast %59 : vector<2x1x256xf32> to vector<2x256xf32>
    %61 = vector.extract_strided_slice %46 {offsets = [0, 3, 0], sizes = [2, 1, 256], strides = [1, 1, 1]} : vector<2x4x256xf32> to vector<2x1x256xf32>
    %62 = vector.shape_cast %61 : vector<2x1x256xf32> to vector<2x256xf32>
    %cst_76 = arith.constant 0.000000e+00 : f32
    %63 = vector.broadcast %cst_76 : f32 to vector<2x256xf32>
    %cst_77 = arith.constant 0.000000e+00 : f32
    %64 = vector.broadcast %cst_77 : f32 to vector<2x256xf32>
    %cst_78 = arith.constant 0.000000e+00 : f32
    %65 = vector.broadcast %cst_78 : f32 to vector<2x256xf32>
    %66 = vector.broadcast %0 : f32 to vector<2x256xf32>
    %67 = arith.mulf %66, %48 : vector<2x256xf32>
    %68 = arith.addf %64, %67 : vector<2x256xf32>
    %69 = vector.broadcast %0 : f32 to vector<2x256xf32>
    %70 = arith.mulf %69, %56 : vector<2x256xf32>
    %71 = arith.addf %65, %70 : vector<2x256xf32>
    %72 = vector.broadcast %1 : f32 to vector<2x256xf32>
    %73 = arith.mulf %72, %50 : vector<2x256xf32>
    %74 = arith.addf %68, %73 : vector<2x256xf32>
    %75 = vector.broadcast %1 : f32 to vector<2x256xf32>
    %76 = arith.mulf %75, %58 : vector<2x256xf32>
    %77 = arith.addf %71, %76 : vector<2x256xf32>
    %78 = vector.broadcast %2 : f32 to vector<2x256xf32>
    %79 = arith.mulf %78, %52 : vector<2x256xf32>
    %80 = arith.addf %74, %79 : vector<2x256xf32>
    %81 = vector.broadcast %2 : f32 to vector<2x256xf32>
    %82 = arith.mulf %81, %60 : vector<2x256xf32>
    %83 = arith.addf %77, %82 : vector<2x256xf32>
    %84 = vector.broadcast %3 : f32 to vector<2x256xf32>
    %85 = arith.mulf %84, %54 : vector<2x256xf32>
    %86 = arith.addf %80, %85 : vector<2x256xf32>
    %87 = vector.broadcast %3 : f32 to vector<2x256xf32>
    %88 = arith.mulf %87, %62 : vector<2x256xf32>
    %89 = arith.addf %83, %88 : vector<2x256xf32>
    %cst_79 = arith.constant 0.000000e+00 : f32
    %90 = vector.broadcast %cst_79 : f32 to vector<2x256xf32>
    %91 = arith.maximumf %86, %90 : vector<2x256xf32>
    %cst_80 = arith.constant 0.000000e+00 : f32
    %92 = vector.broadcast %cst_80 : f32 to vector<2x256xf32>
    %93 = arith.maximumf %89, %92 : vector<2x256xf32>
    %94 = arith.subf %91, %93 : vector<2x256xf32>
    %95 = vector.broadcast %32 : f32 to vector<2x256xf32>
    %96 = arith.mulf %95, %94 : vector<2x256xf32>
    %97 = arith.addf %63, %96 : vector<2x256xf32>
    %cst_81 = arith.constant 0.000000e+00 : f32
    %98 = vector.broadcast %cst_81 : f32 to vector<2x256xf32>
    %cst_82 = arith.constant 0.000000e+00 : f32
    %99 = vector.broadcast %cst_82 : f32 to vector<2x256xf32>
    %100 = vector.broadcast %4 : f32 to vector<2x256xf32>
    %101 = arith.mulf %100, %48 : vector<2x256xf32>
    %102 = arith.addf %98, %101 : vector<2x256xf32>
    %103 = vector.broadcast %4 : f32 to vector<2x256xf32>
    %104 = arith.mulf %103, %56 : vector<2x256xf32>
    %105 = arith.addf %99, %104 : vector<2x256xf32>
    %106 = vector.broadcast %5 : f32 to vector<2x256xf32>
    %107 = arith.mulf %106, %50 : vector<2x256xf32>
    %108 = arith.addf %102, %107 : vector<2x256xf32>
    %109 = vector.broadcast %5 : f32 to vector<2x256xf32>
    %110 = arith.mulf %109, %58 : vector<2x256xf32>
    %111 = arith.addf %105, %110 : vector<2x256xf32>
    %112 = vector.broadcast %6 : f32 to vector<2x256xf32>
    %113 = arith.mulf %112, %52 : vector<2x256xf32>
    %114 = arith.addf %108, %113 : vector<2x256xf32>
    %115 = vector.broadcast %6 : f32 to vector<2x256xf32>
    %116 = arith.mulf %115, %60 : vector<2x256xf32>
    %117 = arith.addf %111, %116 : vector<2x256xf32>
    %118 = vector.broadcast %7 : f32 to vector<2x256xf32>
    %119 = arith.mulf %118, %54 : vector<2x256xf32>
    %120 = arith.addf %114, %119 : vector<2x256xf32>
    %121 = vector.broadcast %7 : f32 to vector<2x256xf32>
    %122 = arith.mulf %121, %62 : vector<2x256xf32>
    %123 = arith.addf %117, %122 : vector<2x256xf32>
    %cst_83 = arith.constant 0.000000e+00 : f32
    %124 = vector.broadcast %cst_83 : f32 to vector<2x256xf32>
    %125 = arith.maximumf %120, %124 : vector<2x256xf32>
    %cst_84 = arith.constant 0.000000e+00 : f32
    %126 = vector.broadcast %cst_84 : f32 to vector<2x256xf32>
    %127 = arith.maximumf %123, %126 : vector<2x256xf32>
    %128 = arith.subf %125, %127 : vector<2x256xf32>
    %129 = vector.broadcast %33 : f32 to vector<2x256xf32>
    %130 = arith.mulf %129, %128 : vector<2x256xf32>
    %131 = arith.addf %97, %130 : vector<2x256xf32>
    %cst_85 = arith.constant 0.000000e+00 : f32
    %132 = vector.broadcast %cst_85 : f32 to vector<2x256xf32>
    %cst_86 = arith.constant 0.000000e+00 : f32
    %133 = vector.broadcast %cst_86 : f32 to vector<2x256xf32>
    %134 = vector.broadcast %8 : f32 to vector<2x256xf32>
    %135 = arith.mulf %134, %48 : vector<2x256xf32>
    %136 = arith.addf %132, %135 : vector<2x256xf32>
    %137 = vector.broadcast %8 : f32 to vector<2x256xf32>
    %138 = arith.mulf %137, %56 : vector<2x256xf32>
    %139 = arith.addf %133, %138 : vector<2x256xf32>
    %140 = vector.broadcast %9 : f32 to vector<2x256xf32>
    %141 = arith.mulf %140, %50 : vector<2x256xf32>
    %142 = arith.addf %136, %141 : vector<2x256xf32>
    %143 = vector.broadcast %9 : f32 to vector<2x256xf32>
    %144 = arith.mulf %143, %58 : vector<2x256xf32>
    %145 = arith.addf %139, %144 : vector<2x256xf32>
    %146 = vector.broadcast %10 : f32 to vector<2x256xf32>
    %147 = arith.mulf %146, %52 : vector<2x256xf32>
    %148 = arith.addf %142, %147 : vector<2x256xf32>
    %149 = vector.broadcast %10 : f32 to vector<2x256xf32>
    %150 = arith.mulf %149, %60 : vector<2x256xf32>
    %151 = arith.addf %145, %150 : vector<2x256xf32>
    %152 = vector.broadcast %11 : f32 to vector<2x256xf32>
    %153 = arith.mulf %152, %54 : vector<2x256xf32>
    %154 = arith.addf %148, %153 : vector<2x256xf32>
    %155 = vector.broadcast %11 : f32 to vector<2x256xf32>
    %156 = arith.mulf %155, %62 : vector<2x256xf32>
    %157 = arith.addf %151, %156 : vector<2x256xf32>
    %cst_87 = arith.constant 0.000000e+00 : f32
    %158 = vector.broadcast %cst_87 : f32 to vector<2x256xf32>
    %159 = arith.maximumf %154, %158 : vector<2x256xf32>
    %cst_88 = arith.constant 0.000000e+00 : f32
    %160 = vector.broadcast %cst_88 : f32 to vector<2x256xf32>
    %161 = arith.maximumf %157, %160 : vector<2x256xf32>
    %162 = arith.subf %159, %161 : vector<2x256xf32>
    %163 = vector.broadcast %34 : f32 to vector<2x256xf32>
    %164 = arith.mulf %163, %162 : vector<2x256xf32>
    %165 = arith.addf %131, %164 : vector<2x256xf32>
    %cst_89 = arith.constant 0.000000e+00 : f32
    %166 = vector.broadcast %cst_89 : f32 to vector<2x256xf32>
    %cst_90 = arith.constant 0.000000e+00 : f32
    %167 = vector.broadcast %cst_90 : f32 to vector<2x256xf32>
    %168 = vector.broadcast %12 : f32 to vector<2x256xf32>
    %169 = arith.mulf %168, %48 : vector<2x256xf32>
    %170 = arith.addf %166, %169 : vector<2x256xf32>
    %171 = vector.broadcast %12 : f32 to vector<2x256xf32>
    %172 = arith.mulf %171, %56 : vector<2x256xf32>
    %173 = arith.addf %167, %172 : vector<2x256xf32>
    %174 = vector.broadcast %13 : f32 to vector<2x256xf32>
    %175 = arith.mulf %174, %50 : vector<2x256xf32>
    %176 = arith.addf %170, %175 : vector<2x256xf32>
    %177 = vector.broadcast %13 : f32 to vector<2x256xf32>
    %178 = arith.mulf %177, %58 : vector<2x256xf32>
    %179 = arith.addf %173, %178 : vector<2x256xf32>
    %180 = vector.broadcast %14 : f32 to vector<2x256xf32>
    %181 = arith.mulf %180, %52 : vector<2x256xf32>
    %182 = arith.addf %176, %181 : vector<2x256xf32>
    %183 = vector.broadcast %14 : f32 to vector<2x256xf32>
    %184 = arith.mulf %183, %60 : vector<2x256xf32>
    %185 = arith.addf %179, %184 : vector<2x256xf32>
    %186 = vector.broadcast %15 : f32 to vector<2x256xf32>
    %187 = arith.mulf %186, %54 : vector<2x256xf32>
    %188 = arith.addf %182, %187 : vector<2x256xf32>
    %189 = vector.broadcast %15 : f32 to vector<2x256xf32>
    %190 = arith.mulf %189, %62 : vector<2x256xf32>
    %191 = arith.addf %185, %190 : vector<2x256xf32>
    %cst_91 = arith.constant 0.000000e+00 : f32
    %192 = vector.broadcast %cst_91 : f32 to vector<2x256xf32>
    %193 = arith.maximumf %188, %192 : vector<2x256xf32>
    %cst_92 = arith.constant 0.000000e+00 : f32
    %194 = vector.broadcast %cst_92 : f32 to vector<2x256xf32>
    %195 = arith.maximumf %191, %194 : vector<2x256xf32>
    %196 = arith.subf %193, %195 : vector<2x256xf32>
    %197 = vector.broadcast %35 : f32 to vector<2x256xf32>
    %198 = arith.mulf %197, %196 : vector<2x256xf32>
    %199 = arith.addf %165, %198 : vector<2x256xf32>
    %cst_93 = arith.constant 0.000000e+00 : f32
    %200 = vector.broadcast %cst_93 : f32 to vector<2x256xf32>
    %cst_94 = arith.constant 0.000000e+00 : f32
    %201 = vector.broadcast %cst_94 : f32 to vector<2x256xf32>
    %202 = vector.broadcast %16 : f32 to vector<2x256xf32>
    %203 = arith.mulf %202, %48 : vector<2x256xf32>
    %204 = arith.addf %200, %203 : vector<2x256xf32>
    %205 = vector.broadcast %16 : f32 to vector<2x256xf32>
    %206 = arith.mulf %205, %56 : vector<2x256xf32>
    %207 = arith.addf %201, %206 : vector<2x256xf32>
    %208 = vector.broadcast %17 : f32 to vector<2x256xf32>
    %209 = arith.mulf %208, %50 : vector<2x256xf32>
    %210 = arith.addf %204, %209 : vector<2x256xf32>
    %211 = vector.broadcast %17 : f32 to vector<2x256xf32>
    %212 = arith.mulf %211, %58 : vector<2x256xf32>
    %213 = arith.addf %207, %212 : vector<2x256xf32>
    %214 = vector.broadcast %18 : f32 to vector<2x256xf32>
    %215 = arith.mulf %214, %52 : vector<2x256xf32>
    %216 = arith.addf %210, %215 : vector<2x256xf32>
    %217 = vector.broadcast %18 : f32 to vector<2x256xf32>
    %218 = arith.mulf %217, %60 : vector<2x256xf32>
    %219 = arith.addf %213, %218 : vector<2x256xf32>
    %220 = vector.broadcast %19 : f32 to vector<2x256xf32>
    %221 = arith.mulf %220, %54 : vector<2x256xf32>
    %222 = arith.addf %216, %221 : vector<2x256xf32>
    %223 = vector.broadcast %19 : f32 to vector<2x256xf32>
    %224 = arith.mulf %223, %62 : vector<2x256xf32>
    %225 = arith.addf %219, %224 : vector<2x256xf32>
    %cst_95 = arith.constant 0.000000e+00 : f32
    %226 = vector.broadcast %cst_95 : f32 to vector<2x256xf32>
    %227 = arith.maximumf %222, %226 : vector<2x256xf32>
    %cst_96 = arith.constant 0.000000e+00 : f32
    %228 = vector.broadcast %cst_96 : f32 to vector<2x256xf32>
    %229 = arith.maximumf %225, %228 : vector<2x256xf32>
    %230 = arith.subf %227, %229 : vector<2x256xf32>
    %231 = vector.broadcast %36 : f32 to vector<2x256xf32>
    %232 = arith.mulf %231, %230 : vector<2x256xf32>
    %233 = arith.addf %199, %232 : vector<2x256xf32>
    %cst_97 = arith.constant 0.000000e+00 : f32
    %234 = vector.broadcast %cst_97 : f32 to vector<2x256xf32>
    %cst_98 = arith.constant 0.000000e+00 : f32
    %235 = vector.broadcast %cst_98 : f32 to vector<2x256xf32>
    %236 = vector.broadcast %20 : f32 to vector<2x256xf32>
    %237 = arith.mulf %236, %48 : vector<2x256xf32>
    %238 = arith.addf %234, %237 : vector<2x256xf32>
    %239 = vector.broadcast %20 : f32 to vector<2x256xf32>
    %240 = arith.mulf %239, %56 : vector<2x256xf32>
    %241 = arith.addf %235, %240 : vector<2x256xf32>
    %242 = vector.broadcast %21 : f32 to vector<2x256xf32>
    %243 = arith.mulf %242, %50 : vector<2x256xf32>
    %244 = arith.addf %238, %243 : vector<2x256xf32>
    %245 = vector.broadcast %21 : f32 to vector<2x256xf32>
    %246 = arith.mulf %245, %58 : vector<2x256xf32>
    %247 = arith.addf %241, %246 : vector<2x256xf32>
    %248 = vector.broadcast %22 : f32 to vector<2x256xf32>
    %249 = arith.mulf %248, %52 : vector<2x256xf32>
    %250 = arith.addf %244, %249 : vector<2x256xf32>
    %251 = vector.broadcast %22 : f32 to vector<2x256xf32>
    %252 = arith.mulf %251, %60 : vector<2x256xf32>
    %253 = arith.addf %247, %252 : vector<2x256xf32>
    %254 = vector.broadcast %23 : f32 to vector<2x256xf32>
    %255 = arith.mulf %254, %54 : vector<2x256xf32>
    %256 = arith.addf %250, %255 : vector<2x256xf32>
    %257 = vector.broadcast %23 : f32 to vector<2x256xf32>
    %258 = arith.mulf %257, %62 : vector<2x256xf32>
    %259 = arith.addf %253, %258 : vector<2x256xf32>
    %cst_99 = arith.constant 0.000000e+00 : f32
    %260 = vector.broadcast %cst_99 : f32 to vector<2x256xf32>
    %261 = arith.maximumf %256, %260 : vector<2x256xf32>
    %cst_100 = arith.constant 0.000000e+00 : f32
    %262 = vector.broadcast %cst_100 : f32 to vector<2x256xf32>
    %263 = arith.maximumf %259, %262 : vector<2x256xf32>
    %264 = arith.subf %261, %263 : vector<2x256xf32>
    %265 = vector.broadcast %37 : f32 to vector<2x256xf32>
    %266 = arith.mulf %265, %264 : vector<2x256xf32>
    %267 = arith.addf %233, %266 : vector<2x256xf32>
    %cst_101 = arith.constant 0.000000e+00 : f32
    %268 = vector.broadcast %cst_101 : f32 to vector<2x256xf32>
    %cst_102 = arith.constant 0.000000e+00 : f32
    %269 = vector.broadcast %cst_102 : f32 to vector<2x256xf32>
    %270 = vector.broadcast %24 : f32 to vector<2x256xf32>
    %271 = arith.mulf %270, %48 : vector<2x256xf32>
    %272 = arith.addf %268, %271 : vector<2x256xf32>
    %273 = vector.broadcast %24 : f32 to vector<2x256xf32>
    %274 = arith.mulf %273, %56 : vector<2x256xf32>
    %275 = arith.addf %269, %274 : vector<2x256xf32>
    %276 = vector.broadcast %25 : f32 to vector<2x256xf32>
    %277 = arith.mulf %276, %50 : vector<2x256xf32>
    %278 = arith.addf %272, %277 : vector<2x256xf32>
    %279 = vector.broadcast %25 : f32 to vector<2x256xf32>
    %280 = arith.mulf %279, %58 : vector<2x256xf32>
    %281 = arith.addf %275, %280 : vector<2x256xf32>
    %282 = vector.broadcast %26 : f32 to vector<2x256xf32>
    %283 = arith.mulf %282, %52 : vector<2x256xf32>
    %284 = arith.addf %278, %283 : vector<2x256xf32>
    %285 = vector.broadcast %26 : f32 to vector<2x256xf32>
    %286 = arith.mulf %285, %60 : vector<2x256xf32>
    %287 = arith.addf %281, %286 : vector<2x256xf32>
    %288 = vector.broadcast %27 : f32 to vector<2x256xf32>
    %289 = arith.mulf %288, %54 : vector<2x256xf32>
    %290 = arith.addf %284, %289 : vector<2x256xf32>
    %291 = vector.broadcast %27 : f32 to vector<2x256xf32>
    %292 = arith.mulf %291, %62 : vector<2x256xf32>
    %293 = arith.addf %287, %292 : vector<2x256xf32>
    %cst_103 = arith.constant 0.000000e+00 : f32
    %294 = vector.broadcast %cst_103 : f32 to vector<2x256xf32>
    %295 = arith.maximumf %290, %294 : vector<2x256xf32>
    %cst_104 = arith.constant 0.000000e+00 : f32
    %296 = vector.broadcast %cst_104 : f32 to vector<2x256xf32>
    %297 = arith.maximumf %293, %296 : vector<2x256xf32>
    %298 = arith.subf %295, %297 : vector<2x256xf32>
    %299 = vector.broadcast %38 : f32 to vector<2x256xf32>
    %300 = arith.mulf %299, %298 : vector<2x256xf32>
    %301 = arith.addf %267, %300 : vector<2x256xf32>
    %cst_105 = arith.constant 0.000000e+00 : f32
    %302 = vector.broadcast %cst_105 : f32 to vector<2x256xf32>
    %cst_106 = arith.constant 0.000000e+00 : f32
    %303 = vector.broadcast %cst_106 : f32 to vector<2x256xf32>
    %304 = vector.broadcast %28 : f32 to vector<2x256xf32>
    %305 = arith.mulf %304, %48 : vector<2x256xf32>
    %306 = arith.addf %302, %305 : vector<2x256xf32>
    %307 = vector.broadcast %28 : f32 to vector<2x256xf32>
    %308 = arith.mulf %307, %56 : vector<2x256xf32>
    %309 = arith.addf %303, %308 : vector<2x256xf32>
    %310 = vector.broadcast %29 : f32 to vector<2x256xf32>
    %311 = arith.mulf %310, %50 : vector<2x256xf32>
    %312 = arith.addf %306, %311 : vector<2x256xf32>
    %313 = vector.broadcast %29 : f32 to vector<2x256xf32>
    %314 = arith.mulf %313, %58 : vector<2x256xf32>
    %315 = arith.addf %309, %314 : vector<2x256xf32>
    %316 = vector.broadcast %30 : f32 to vector<2x256xf32>
    %317 = arith.mulf %316, %52 : vector<2x256xf32>
    %318 = arith.addf %312, %317 : vector<2x256xf32>
    %319 = vector.broadcast %30 : f32 to vector<2x256xf32>
    %320 = arith.mulf %319, %60 : vector<2x256xf32>
    %321 = arith.addf %315, %320 : vector<2x256xf32>
    %322 = vector.broadcast %31 : f32 to vector<2x256xf32>
    %323 = arith.mulf %322, %54 : vector<2x256xf32>
    %324 = arith.addf %318, %323 : vector<2x256xf32>
    %325 = vector.broadcast %31 : f32 to vector<2x256xf32>
    %326 = arith.mulf %325, %62 : vector<2x256xf32>
    %327 = arith.addf %321, %326 : vector<2x256xf32>
    %cst_107 = arith.constant 0.000000e+00 : f32
    %328 = vector.broadcast %cst_107 : f32 to vector<2x256xf32>
    %329 = arith.maximumf %324, %328 : vector<2x256xf32>
    %cst_108 = arith.constant 0.000000e+00 : f32
    %330 = vector.broadcast %cst_108 : f32 to vector<2x256xf32>
    %331 = arith.maximumf %327, %330 : vector<2x256xf32>
    %332 = arith.subf %329, %331 : vector<2x256xf32>
    %333 = vector.broadcast %39 : f32 to vector<2x256xf32>
    %334 = arith.mulf %333, %332 : vector<2x256xf32>
    %335 = arith.addf %301, %334 : vector<2x256xf32>
    %336 = arith.mulf %335, %335 : vector<2x256xf32>
    %337 = arith.addf %40, %336 : vector<2x256xf32>
    %c1_i32 = arith.constant 1 : i32
    %c0_109 = arith.constant 0 : index
    %c0_110 = arith.constant 0 : index
    %c0_111 = arith.constant 0 : index
    %c0_112 = arith.constant 0 : index
    %338 = vector.load %arg6[%c0_109, %c0_110, %c0_111, %c0_112] : memref<1x1x2x256xf32, #tpu.memory_space<vmem>>, vector<1x1x2x256xf32>
    %339 = vector.shape_cast %338 : vector<1x1x2x256xf32> to vector<2x256xf32>
    %340 = vector.shape_cast %337 : vector<2x256xf32> to vector<1x1x2x256xf32>
    tpu.vector_store %arg6[%c0_109, %c0_110, %c0_111, %c0_112], %340 {strides = array<i32>} : memref<1x1x2x256xf32, #tpu.memory_space<vmem>>, vector<1x1x2x256xf32>,
    return
  }
  func.func @transform_0(%arg0: i32, %arg1: i32) -> (i32, i32, i32) {
    %c0_i32 = arith.constant 0 : i32
    %c0_i32_0 = arith.constant 0 : i32
    return %arg0, %c0_i32, %arg1 : i32, i32, i32
  }
  func.func @transform_1(%arg0: i32, %arg1: i32) -> (i32, i32, i32) {
    %c0_i32 = arith.constant 0 : i32
    %c0_i32_0 = arith.constant 0 : i32
    return %arg0, %c0_i32, %arg1 : i32, i32, i32
  }
  func.func @transform_2(%arg0: i32, %arg1: i32) -> (i32, i32) {
    %c0_i32 = arith.constant 0 : i32
    %c0_i32_0 = arith.constant 0 : i32
    %c0_i32_1 = arith.constant 0 : i32
    return %c0_i32, %c0_i32_0 : i32, i32
  }
  func.func @transform_3(%arg0: i32, %arg1: i32) -> (i32, i32) {
    %c0_i32 = arith.constant 0 : i32
    %c0_i32_0 = arith.constant 0 : i32
    %c0_i32_1 = arith.constant 0 : i32
    return %c0_i32, %c0_i32_0 : i32, i32
  }
  func.func @transform_4(%arg0: i32, %arg1: i32) -> (i32, i32, i32, i32) {
    %c0_i32 = arith.constant 0 : i32
    %c0_i32_0 = arith.constant 0 : i32
    %c0_i32_1 = arith.constant 0 : i32
    return %arg0, %arg1, %c0_i32, %c0_i32_0 : i32, i32, i32, i32
  }
}

</mosaic_0001>

<bundles_post_ra>
// kernel: tpu_custom_call.1
= control target key start
LH: loop header
LB: loop body
LE: loop exit
PB: predicated region body
PF: predicated region fallthrough
CT: control target
= control target key end

     0   :  { %9 = vsyncpa [#allocation3], 0  ;;  %s1455_s0 = inlined_call_operand.vmem [shape: f32[2,4,256], index: 0, kind: input, shape index: {}]   ;;  %s1456_s1 = inlined_call_operand.hbm [shape: f32[2,4,256], index: 1, kind: input, shape index: {}]   ;;  %s1457_s2 = inlined_call_operand.vmem [shape: f32[8,4], index: 2, kind: input, shape index: {}]   ;;  %s1458_s3 = inlined_call_operand.vmem [shape: f32[8,1], index: 3, kind: input, shape index: {}]   ;;  %s1459_s4 = inlined_call_operand.hbm [shape: f32[1,1,2,256], index: 4, kind: output, shape index: {}]  }
   0x1   :  { %10 = vsyncpa [#allocation5], 0 }
   0x2   :  { %11 = vsyncpa [#allocation8], 0 }
   0x3   :  { %12 = vsyncpa [#allocation4], 0  ;;  %s1130_s15 = smov [#allocation2]   ;;  %s33_s19 = sshll.u32 %s1457_s2, 4  ;;  %s34_s19 = int_to_ptr.vmem [resolvable:$true] %s33_s19 }
   0x4   :  { %s20_s16 = sshll.u32 %s1130_s15, 4  ;;  %s1054_s22 = scalar_lea.hbm %s1456_s1, 256  ;;  %s21_s16 = int_to_ptr.vmem [resolvable:$true] %s20_s16 }
   0x5   :  { %p1055_p0 = scmp.ne.s32.totalorder %s1456_s1, %s1054_s22  ;;  %p1058_p1 = scmp.lt.u32.totalorder %s1054_s22, %s1456_s1 }
   0x7   :  { %p1060_p2 = pnand %p1058_p1, %p1055_p0 }
   0x9   :  { %1063 = shalt.err (!%p1060_p2)
}
   0xa   :  { %s1064_s27 = scalar_lea.vmem %s21_s16, 256  ;;  %p1069_p4 = scmp.lt.s32.totalorder %s21_s16, %s21_s16 }
   0xb   :  { %p1065_p3 = scmp.ne.s32.totalorder %s21_s16, %s1064_s27  ;;  %p1070_p5 = scmp.lt.s32.totalorder %s1064_s27, %s1064_s27 }
   0xd   :  { %p1071_p6 = por %p1070_p5, %p1069_p4 }
   0xf   :  { %p1072_p7 = pnand %p1071_p6, %p1065_p3 }
  0x11   :  { %1075 = shalt.err (!%p1072_p7)
}
  0x12   :  { %s1131_s2 = smov 128   ;;  %s1132_s28 = smov 8  }
  0x13   :  { %26 = dma.hbm_to_vmem [thread:$0]  %s1456_s1, 256, %s21_s16, [#allocation3], %s1131_s2, %s1131_s2, %s1132_s28  }
  0x14   :  { %s1076_s5 = scalar_lea.vmem %s34_s19, 128  ;;  %p1081_p9 = scmp.lt.s32.totalorder %s34_s19, %s34_s19 }
  0x15   :  { %p1077_p8 = scmp.ne.s32.totalorder %s34_s19, %s1076_s5  ;;  %p1082_p10 = scmp.lt.s32.totalorder %s1076_s5, %s1076_s5 }
  0x17   :  { %p1083_p11 = por %p1082_p10, %p1081_p9 }
  0x19   :  { %p1084_p12 = pnand %p1083_p11, %p1077_p8 }
  0x1b   :  { %1087 = shalt.err (!%p1084_p12)
}
  0x1c   :  { %s1133_s6 = smov [#allocation6]   ;;  %s43_s9 = sshll.u32 %s1458_s3, 4  ;;  %s44_s9 = int_to_ptr.vmem [resolvable:$true] %s43_s9 }
  0x1d   :  { %36 = dma.vmem_to_smem %s34_s19, 128, %s1133_s6, [#allocation5]  }
  0x1e   :  { %s1088_s10 = scalar_lea.vmem %s44_s9, 128  ;;  %p1093_p0 = scmp.lt.s32.totalorder %s44_s9, %s44_s9 }
  0x1f   :  { %p1089_p13 = scmp.ne.s32.totalorder %s44_s9, %s1088_s10  ;;  %p1094_p1 = scmp.lt.s32.totalorder %s1088_s10, %s1088_s10 }
  0x21   :  { %p1095_p2 = por %p1094_p1, %p1093_p0 }
  0x23   :  { %p1096_p3 = pnand %p1095_p2, %p1089_p13 }
  0x25   :  { %1099 = shalt.err (!%p1096_p3)
}
  0x26   :  { %s1134_s1 = smov [#allocation7]  }
  0x27   :  { %46 = dma.vmem_to_smem %s44_s9, 128, %s1134_s1, [#allocation8]  }
  0x28   :  { %1122 = dma.done.wait [#allocation3], 256  }
  0x29   :  { %1123 = vsyncadd [#allocation3], 4294967040 }
  0x2a   :  { %1124 = dma.done.wait [#allocation5], 128  }
  0x2b   :  { %1125 = vsyncadd [#allocation5], 4294967168 }
  0x2c   :  { %1126 = dma.done.wait [#allocation8], 128  }
  0x2d   :  { %1127 = vsyncadd [#allocation8], 4294967168 }
  0x2e   :  { %56 = sfence }
  0x2f   :  { %s57_s11 = sld [smem:[#allocation6]]  ;;  %s913_s12 = sld [smem:[#allocation6 + $0x1]]  ;;  %v1183_v0 = vld [vmem:[%s1455_s0] sm:$0xff]  ;;  %v1188_v1 = vld [vmem:[%s1455_s0 + $0x8] sm:$0xff]  ;;  %vm886_vm0 = vcmask 1041409   ;;  %vm888_vm1 = vcmask 1043459  }
  0x30   :  { %s914_s3 = sld [smem:[#allocation6 + $0x2]]  ;;  %s915_s13 = sld [smem:[#allocation6 + $0x3]]  ;;  %v1190_v2 = vld [vmem:[#allocation2] sm:$0xff]  ;;  %v1192_v3 = vld [vmem:[#allocation2 + $0x8] sm:$0xff]  ;;  %vm890_vm2 = vcmask 1045509   ;;  %vm892_vm3 = vcmask 1047559  }
  0x31   :  { %s916_s14 = sld [smem:[#allocation6 + $0x80]]  ;;  %s917_s15 = sld [smem:[#allocation6 + $0x81]] }
  0x32   :  { %s1206_s0 = sld [smem:[#allocation6 + $0x82]]  ;;  %s1212_s20 = sld [smem:[#allocation7]] }
  0x33   :  { %s1216_s21 = sld [smem:[#allocation6 + $0x83]]  ;;  %s1224_s22 = sld [smem:[#allocation6 + $0x100]] }
  0x34   :  { %s1226_s23 = sld [smem:[#allocation6 + $0x101]]  ;;  %s1228_s24 = sld [smem:[#allocation6 + $0x102]] }
  0x35   :  { %v101_v4 = vstv %s57_s11  ;;  %v110_v5 = vstv %s913_s12  ;;  %s1230_s25 = sld [smem:[#allocation7 + $0x80]]  ;;  %s1245_s26 = sld [smem:[#allocation6 + $0x103]] }
  0x36   :  { %v102_v6 = vmul.f32 %v101_v4, %v1183_v0  ;;  %v103_v7 = vmul.f32 %v101_v4, %v1188_v1  ;;  %v106_v8 = vmul.f32 %v101_v4, %v1190_v2  ;;  %v107_v9 = vmul.f32 %v101_v4, %v1192_v3  ;;  %s1255_s27 = sld [smem:[#allocation6 + $0x180]]  ;;  %s1266_s28 = sld [smem:[#allocation6 + $0x181]] }
  0x37   :  { %v111_v10 = vmul.f32 %v110_v5, %v1183_v0  ;;  %v112_v11 = vmul.f32 %v110_v5, %v1188_v1  ;;  %v123_v12 = vmul.f32 %v110_v5, %v1190_v2  ;;  %v124_v13 = vmul.f32 %v110_v5, %v1192_v3  ;;  %s1257_s2 = sld [smem:[#allocation7 + $0x100]]  ;;  %s1268_s29 = sld [smem:[#allocation6 + $0x182]] }
  0x38   :  { %v135_v14 = vstv %s914_s3  ;;  %v160_v15 = vstv %s915_s13  ;;  %v196_v16 = vstv %s916_s14  ;;  %v205_v17 = vstv %s917_s15  ;;  %s1282_s30 = sld [smem:[#allocation6 + $0x183]]  ;;  %s1288_s5 = sld [smem:[#allocation6 + $0x200]] }
  0x39   :  { %v951_v18 = vrot.slane %v111_v10, 9  ;;  %v952_v19 = vrot.slane %v112_v11, 9  ;;  %v136_v20 = vmul.f32 %v135_v14, %v1183_v0  ;;  %v137_v21 = vmul.f32 %v135_v14, %v1188_v1  ;;  %s1290_s6 = sld [smem:[#allocation6 + $0x201]]  ;;  %s1302_s7 = sld [smem:[#allocation6 + $0x202]] }
  0x3a   :  { %v953_v22 = vrot.slane %v123_v12, 9  ;;  %v954_v23 = vrot.slane %v124_v13, 9  ;;  %v148_v24 = vmul.f32 %v135_v14, %v1190_v2  ;;  %v149_v25 = vmul.f32 %v135_v14, %v1192_v3  ;;  %s1304_s8 = sld [smem:[#allocation6 + $0x203]]  ;;  %s1310_s9 = sld [smem:[#allocation7 + $0x180]] }
  0x3b   :  { %v121_v26 = vadd.f32 %v951_v18, %v102_v6  ;;  %v122_v27 = vadd.f32 %v952_v19, %v103_v7  ;;  %v955_v28 = vrot.slane %v136_v20, 10  ;;  %v956_v29 = vrot.slane %v137_v21, 10  ;;  %s1322_s10 = sld [smem:[#allocation6 + $0x280]]  ;;  %s1329_s1 = sld [smem:[#allocation6 + $0x281]] }
  0x3c   :  { %v133_v30 = vadd.f32 %v953_v22, %v106_v8  ;;  %v134_v31 = vadd.f32 %v954_v23, %v107_v9  ;;  %v957_v32 = vrot.slane %v148_v24, 10  ;;  %v958_v33 = vrot.slane %v149_v25, 10  ;;  %s1331_s11 = sld [smem:[#allocation6 + $0x282]]  ;;  %s1339_s12 = sld [smem:[#allocation6 + $0x283]] }
  0x3d   :  { %v146_v34 = vadd.f32 %v955_v28, %v121_v26  ;;  %v147_v35 = vadd.f32 %v956_v29, %v122_v27  ;;  %v161_v36 = vmul.f32 %v160_v15, %v1183_v0  ;;  %v162_v37 = vmul.f32 %v160_v15, %v1188_v1  ;;  %s1352_s3 = sld [smem:[#allocation6 + $0x301]]  ;;  %s1354_s13 = sld [smem:[#allocation7 + $0x200]] }
  0x3e   :  { %v158_v38 = vadd.f32 %v957_v32, %v133_v30  ;;  %v159_v39 = vadd.f32 %v958_v33, %v134_v31  ;;  %v173_v40 = vmul.f32 %v160_v15, %v1190_v2  ;;  %v174_v41 = vmul.f32 %v160_v15, %v1192_v3  ;;  %s1359_s14 = sld [smem:[#allocation6 + $0x300]]  ;;  %s1370_s16 = sld [smem:[#allocation6 + $0x302]] }
  0x3f   :  { %v959_v42 = vrot.slane %v161_v36, 11  ;;  %v960_v43 = vrot.slane %v162_v37, 11  ;;  %v197_v44 = vmul.f32 %v196_v16, %v1183_v0  ;;  %v198_v45 = vmul.f32 %v196_v16, %v1188_v1  ;;  %s1365_s15 = sld [smem:[#allocation7 + $0x280]]  ;;  %s1374_s17 = sld [smem:[#allocation6 + $0x303]] }
  0x40   :  { %v961_v46 = vrot.slane %v173_v40, 11  ;;  %v962_v47 = vrot.slane %v174_v41, 11  ;;  %v201_v48 = vmul.f32 %v196_v16, %v1190_v2  ;;  %v202_v49 = vmul.f32 %v196_v16, %v1192_v3  ;;  %s1392_s18 = sld [smem:[#allocation6 + $0x380]]  ;;  %s1398_s19 = sld [smem:[#allocation6 + $0x381]] }
  0x41   :  { %v171_v50 = vadd.f32 %v959_v42, %v146_v34  ;;  %v172_v51 = vadd.f32 %v960_v43, %v147_v35  ;;  %v206_v52 = vmul.f32 %v205_v17, %v1183_v0  ;;  %v207_v53 = vmul.f32 %v205_v17, %v1188_v1 }
  0x42   :  { %v183_v54 = vadd.f32 %v961_v46, %v158_v38  ;;  %v184_v55 = vadd.f32 %v962_v47, %v159_v39  ;;  %v218_v56 = vmul.f32 %v205_v17, %v1190_v2  ;;  %v219_v57 = vmul.f32 %v205_v17, %v1192_v3 }
  0x43   :  { %v185_v58 = vmax.f32 %v171_v50, 0.0  ;;  %v186_v59 = vmax.f32 %v172_v51, 0.0  ;;  %v963_v60 = vrot.slane %v206_v52, 9  ;;  %v964_v61 = vrot.slane %v207_v53, 9 }
  0x44   :  { %v187_v62 = vmax.f32 %v183_v54, 0.0  ;;  %v188_v63 = vmax.f32 %v184_v55, 0.0  ;;  %v965_v4 = vrot.slane %v218_v56, 9  ;;  %v966_v5 = vrot.slane %v219_v57, 9 }
  0x45   :  { %v191_v6 = vstv %s1212_s20  ;;  %v216_v7 = vadd.f32 %v963_v60, %v197_v44  ;;  %v217_v8 = vadd.f32 %v964_v61, %v198_v45  ;;  %v230_v9 = vstv %s1206_s0  ;;  %s1400_s0 = sld [smem:[#allocation6 + $0x382]]  ;;  %s1411_s20 = sld [smem:[#allocation6 + $0x383]] }
  0x46   :  { %v189_v10 = vsub.f32 %v185_v58, %v187_v62  ;;  %v190_v11 = vsub.f32 %v186_v59, %v188_v63  ;;  %v228_v12 = vadd.f32 %v965_v4, %v201_v48  ;;  %v229_v13 = vadd.f32 %v966_v5, %v202_v49 }
  0x47   :  { %v231_v14 = vmul.f32 %v230_v9, %v1183_v0  ;;  %v232_v15 = vmul.f32 %v230_v9, %v1188_v1  ;;  %v243_v16 = vmul.f32 %v230_v9, %v1190_v2  ;;  %v244_v17 = vmul.f32 %v230_v9, %v1192_v3 }
  0x48   :  { %v192_v18 = vmul.f32 %v191_v6, %v189_v10  ;;  %v1238_v19 = vmul.f32 %v191_v6, %v190_v11  ;;  %v255_v20 = vstv %s1216_s21  ;;  %v286_v37 = vstv %s1230_s25  ;;  %s1413_s21 = sld [smem:[#allocation7 + $0x300]] }
  0x49   :  { %v967_v21 = vrot.slane %v231_v14, 10  ;;  %v968_v22 = vrot.slane %v232_v15, 10  ;;  %v969_v23 = vrot.slane %v243_v16, 10  ;;  %v970_v24 = vrot.slane %v244_v17, 10 }
  0x4a   :  { %v256_v25 = vmul.f32 %v255_v20, %v1183_v0  ;;  %v257_v26 = vmul.f32 %v255_v20, %v1188_v1  ;;  %v268_v27 = vmul.f32 %v255_v20, %v1190_v2  ;;  %v269_v28 = vmul.f32 %v255_v20, %v1192_v3 }
  0x4b   :  { %v241_v29 = vadd.f32 %v967_v21, %v216_v7  ;;  %v242_v30 = vadd.f32 %v968_v22, %v217_v8  ;;  %v253_v31 = vadd.f32 %v969_v23, %v228_v12  ;;  %v254_v32 = vadd.f32 %v970_v24, %v229_v13 }
  0x4c   :  { %v971_v33 = vrot.slane %v256_v25, 11  ;;  %v972_v34 = vrot.slane %v257_v26, 11  ;;  %v973_v35 = vrot.slane %v268_v27, 11  ;;  %v974_v36 = vrot.slane %v269_v28, 11 }
  0x4d   :  { %v291_v38 = vstv %s1224_s22  ;;  %v300_v39 = vstv %s1226_s23  ;;  %v325_v40 = vstv %s1228_s24  ;;  %v350_v8 = vstv %s1245_s26  ;;  %s1436_s22 = sld [smem:[#allocation7 + $0x380]]  ;;  %s1136_s23 = smov [#allocation9]  }
  0x4e   :  { %v266_v41 = vadd.f32 %v971_v33, %v241_v29  ;;  %v267_v42 = vadd.f32 %v972_v34, %v242_v30  ;;  %v278_v43 = vadd.f32 %v973_v35, %v253_v31  ;;  %v279_v44 = vadd.f32 %v974_v36, %v254_v32  ;;  %s902_s24 = sshll.u32 %s1136_s23, 4  ;;  %s903_s24 = int_to_ptr.vmem [resolvable:$true] %s902_s24 }
  0x4f   :  { %v292_v45 = vmul.f32 %v291_v38, %v1183_v0  ;;  %v293_v46 = vmul.f32 %v291_v38, %v1188_v1  ;;  %v296_v47 = vmul.f32 %v291_v38, %v1190_v2  ;;  %v297_v48 = vmul.f32 %v291_v38, %v1192_v3  ;;  %s1100_s25 = scalar_lea.vmem %s903_s24, 64  ;;  %p1105_p5 = scmp.lt.s32.totalorder %s903_s24, %s903_s24 }
  0x50   :  { %v280_v49 = vmax.f32 %v266_v41, 0.0  ;;  %v281_v50 = vmax.f32 %v267_v42, 0.0  ;;  %v282_v51 = vmax.f32 %v278_v43, 0.0  ;;  %v283_v52 = vmax.f32 %v279_v44, 0.0  ;;  %p1101_p4 = scmp.ne.s32.totalorder %s903_s24, %s1100_s25  ;;  %p1106_p6 = scmp.lt.s32.totalorder %s1100_s25, %s1100_s25 }
  0x51   :  { %v301_v53 = vmul.f32 %v300_v39, %v1183_v0  ;;  %v302_v54 = vmul.f32 %v300_v39, %v1188_v1  ;;  %v313_v55 = vmul.f32 %v300_v39, %v1190_v2  ;;  %v314_v56 = vmul.f32 %v300_v39, %v1192_v3 }
  0x52   :  { %v284_v57 = vsub.f32 %v280_v49, %v282_v51  ;;  %v285_v58 = vsub.f32 %v281_v50, %v283_v52  ;;  %v326_v59 = vmul.f32 %v325_v40, %v1183_v0  ;;  %v327_v60 = vmul.f32 %v325_v40, %v1188_v1  ;;  %p1107_p7 = por %p1106_p6, %p1105_p5 }
  0x53   :  { %v975_v61 = vrot.slane %v301_v53, 9  ;;  %v976_v62 = vrot.slane %v302_v54, 9  ;;  %v977_v63 = vrot.slane %v313_v55, 9  ;;  %v978_v4 = vrot.slane %v314_v56, 9 }
  0x54   :  { %v287_v5 = vmul.f32 %v286_v37, %v284_v57  ;;  %v979_v6 = vrot.slane %v326_v59, 10  ;;  %v980_v7 = vrot.slane %v327_v60, 10  ;;  %v288_v9 = vmul.f32 %v286_v37, %v285_v58  ;;  %p1108_p8 = pnand %p1107_p7, %p1101_p4 }
  0x55   :  { %v311_v10 = vadd.f32 %v975_v61, %v292_v45  ;;  %v312_v11 = vadd.f32 %v976_v62, %v293_v46  ;;  %v323_v12 = vadd.f32 %v977_v63, %v296_v47  ;;  %v324_v14 = vadd.f32 %v978_v4, %v297_v48 }
  0x56   :  { %v289_v13 = vadd.f32 %v287_v5, %v192_v18  ;;  %v338_v15 = vmul.f32 %v325_v40, %v1190_v2  ;;  %v339_v16 = vmul.f32 %v325_v40, %v1192_v3  ;;  %v351_v21 = vmul.f32 %v350_v8, %v1183_v0 }
  0x57   :  { %v336_v17 = vadd.f32 %v979_v6, %v311_v10  ;;  %v337_v20 = vadd.f32 %v980_v7, %v312_v11  ;;  %v352_v22 = vmul.f32 %v350_v8, %v1188_v1  ;;  %v363_v25 = vmul.f32 %v350_v8, %v1190_v2 }
  0x58   :  { %v981_v23 = vrot.slane %v338_v15, 10  ;;  %v982_v24 = vrot.slane %v339_v16, 10  ;;  %v364_v26 = vmul.f32 %v350_v8, %v1192_v3  ;;  %v983_v27 = vrot.slane %v351_v21, 11 }
  0x59   :  { %v984_v28 = vrot.slane %v352_v22, 11  ;;  %v381_v18 = vstv %s1257_s2  ;;  %v386_v29 = vstv %s1255_s27  ;;  %v985_v32 = vrot.slane %v363_v25, 11 }
  0x5a   :  { %v348_v30 = vadd.f32 %v981_v23, %v323_v12  ;;  %v349_v31 = vadd.f32 %v982_v24, %v324_v14  ;;  %v986_v33 = vrot.slane %v364_v26, 11  ;;  %v361_v34 = vadd.f32 %v983_v27, %v336_v17 }
  0x5b   :  { %v362_v35 = vadd.f32 %v984_v28, %v337_v20  ;;  %v387_v36 = vmul.f32 %v386_v29, %v1183_v0  ;;  %v388_v37 = vmul.f32 %v386_v29, %v1188_v1  ;;  %v391_v40 = vmul.f32 %v386_v29, %v1190_v2 }
  0x5c   :  { %v373_v38 = vadd.f32 %v985_v32, %v348_v30  ;;  %v374_v39 = vadd.f32 %v986_v33, %v349_v31  ;;  %v392_v41 = vmul.f32 %v386_v29, %v1192_v3  ;;  %v375_v42 = vmax.f32 %v361_v34, 0.0 }
  0x5d   :  { %v376_v43 = vmax.f32 %v362_v35, 0.0  ;;  %v395_v44 = vstv %s1266_s28  ;;  %v420_v45 = vstv %s1268_s29  ;;  %v290_v10 = vadd.f32 %v288_v9, %v1238_v19 }
  0x5e   :  { %v377_v46 = vmax.f32 %v373_v38, 0.0  ;;  %v378_v47 = vmax.f32 %v374_v39, 0.0  ;;  %v396_v48 = vmul.f32 %v395_v44, %v1183_v0  ;;  %v397_v49 = vmul.f32 %v395_v44, %v1188_v1 }
  0x5f   :  { %v408_v50 = vmul.f32 %v395_v44, %v1190_v2  ;;  %v409_v51 = vmul.f32 %v395_v44, %v1192_v3  ;;  %v421_v52 = vmul.f32 %v420_v45, %v1183_v0  ;;  %v422_v53 = vmul.f32 %v420_v45, %v1188_v1 }
  0x60   :  { %v379_v54 = vsub.f32 %v375_v42, %v377_v46  ;;  %v380_v55 = vsub.f32 %v376_v43, %v378_v47  ;;  %v987_v56 = vrot.slane %v396_v48, 9  ;;  %v988_v57 = vrot.slane %v397_v49, 9 }
  0x61   :  { %v989_v58 = vrot.slane %v408_v50, 9  ;;  %v990_v59 = vrot.slane %v409_v51, 9  ;;  %v991_v60 = vrot.slane %v421_v52, 10  ;;  %v992_v61 = vrot.slane %v422_v53, 10 }
  0x62   :  { %v382_v62 = vmul.f32 %v381_v18, %v379_v54  ;;  %v406_v63 = vadd.f32 %v987_v56, %v387_v36  ;;  %v407_v4 = vadd.f32 %v988_v57, %v388_v37  ;;  %v433_v7 = vmul.f32 %v420_v45, %v1190_v2 }
  0x63   :  { %v418_v5 = vadd.f32 %v989_v58, %v391_v40  ;;  %v419_v6 = vadd.f32 %v990_v59, %v392_v41  ;;  %v434_v8 = vmul.f32 %v420_v45, %v1192_v3  ;;  %v383_v11 = vmul.f32 %v381_v18, %v380_v55 }
  0x64   :  { %v1299_v12 = vadd.f32 %v382_v62, %v289_v13  ;;  %v431_v14 = vadd.f32 %v991_v60, %v406_v63  ;;  %v432_v15 = vadd.f32 %v992_v61, %v407_v4  ;;  %v993_v16 = vrot.slane %v433_v7, 10 }
  0x65   :  { %v994_v17 = vrot.slane %v434_v8, 10  ;;  %v445_v20 = vstv %s1282_s30  ;;  %v481_v24 = vstv %s1288_s5  ;;  %v490_v25 = vstv %s1290_s6 }
  0x66   :  { %v446_v21 = vmul.f32 %v445_v20, %v1183_v0  ;;  %v447_v22 = vmul.f32 %v445_v20, %v1188_v1  ;;  %v458_v19 = vmul.f32 %v445_v20, %v1190_v2  ;;  %v459_v9 = vmul.f32 %v445_v20, %v1192_v3 }
  0x67   :  { %v443_v13 = vadd.f32 %v993_v16, %v418_v5  ;;  %v444_v23 = vadd.f32 %v994_v17, %v419_v6  ;;  %v482_v29 = vmul.f32 %v481_v24, %v1183_v0  ;;  %v483_v30 = vmul.f32 %v481_v24, %v1188_v1 }
  0x68   :  { %v995_v26 = vrot.slane %v446_v21, 11  ;;  %v996_v27 = vrot.slane %v447_v22, 11  ;;  %v997_v28 = vrot.slane %v458_v19, 11  ;;  %v998_v18 = vrot.slane %v459_v9, 11 }
  0x69   :  { %v486_v31 = vmul.f32 %v481_v24, %v1190_v2  ;;  %v487_v32 = vmul.f32 %v481_v24, %v1192_v3  ;;  %v491_v37 = vmul.f32 %v490_v25, %v1183_v0  ;;  %v492_v38 = vmul.f32 %v490_v25, %v1188_v1 }
  0x6a   :  { %v456_v33 = vadd.f32 %v995_v26, %v431_v14  ;;  %v457_v34 = vadd.f32 %v996_v27, %v432_v15  ;;  %v468_v35 = vadd.f32 %v997_v28, %v443_v13  ;;  %v469_v36 = vadd.f32 %v998_v18, %v444_v23 }
  0x6b   :  { %v503_v39 = vmul.f32 %v490_v25, %v1190_v2  ;;  %v504_v40 = vmul.f32 %v490_v25, %v1192_v3  ;;  %v999_v45 = vrot.slane %v491_v37, 9  ;;  %v1000_v46 = vrot.slane %v492_v38, 9 }
  0x6c   :  { %v470_v41 = vmax.f32 %v456_v33, 0.0  ;;  %v471_v42 = vmax.f32 %v457_v34, 0.0  ;;  %v472_v43 = vmax.f32 %v468_v35, 0.0  ;;  %v473_v44 = vmax.f32 %v469_v36, 0.0 }
  0x6d   :  { %v1001_v47 = vrot.slane %v503_v39, 9  ;;  %v1002_v48 = vrot.slane %v504_v40, 9  ;;  %v515_v51 = vstv %s1302_s7  ;;  %v540_v52 = vstv %s1304_s8 }
  0x6e   :  { %v474_v49 = vsub.f32 %v470_v41, %v472_v43  ;;  %v475_v50 = vsub.f32 %v471_v42, %v473_v44  ;;  %v385_v53 = vadd.f32 %v383_v11, %v290_v10  ;;  %v476_v54 = vstv %s1310_s9 }
  0x6f   :  { %v501_v55 = vadd.f32 %v999_v45, %v482_v29  ;;  %v502_v56 = vadd.f32 %v1000_v46, %v483_v30  ;;  %v513_v57 = vadd.f32 %v1001_v47, %v486_v31  ;;  %v514_v58 = vadd.f32 %v1002_v48, %v487_v32 }
  0x70   :  { %v516_v59 = vmul.f32 %v515_v51, %v1183_v0  ;;  %v517_v60 = vmul.f32 %v515_v51, %v1188_v1  ;;  %v528_v61 = vmul.f32 %v515_v51, %v1190_v2  ;;  %v529_v62 = vmul.f32 %v515_v51, %v1192_v3 }
  0x71   :  { %v541_v63 = vmul.f32 %v540_v52, %v1183_v0  ;;  %v542_v4 = vmul.f32 %v540_v52, %v1188_v1  ;;  %v477_v5 = vmul.f32 %v476_v54, %v474_v49  ;;  %v478_v6 = vmul.f32 %v476_v54, %v475_v50 }
  0x72   :  { %v1003_v7 = vrot.slane %v516_v59, 10  ;;  %v1004_v8 = vrot.slane %v517_v60, 10  ;;  %v1005_v10 = vrot.slane %v528_v61, 10  ;;  %v1006_v11 = vrot.slane %v529_v62, 10 }
  0x73   :  { %v1007_v14 = vrot.slane %v541_v63, 11  ;;  %v1008_v15 = vrot.slane %v542_v4, 11  ;;  %v553_v20 = vmul.f32 %v540_v52, %v1190_v2  ;;  %v554_v21 = vmul.f32 %v540_v52, %v1192_v3 }
  0x74   :  { %v526_v16 = vadd.f32 %v1003_v7, %v501_v55  ;;  %v527_v17 = vadd.f32 %v1004_v8, %v502_v56  ;;  %v538_v22 = vadd.f32 %v1005_v10, %v513_v57  ;;  %v539_v19 = vadd.f32 %v1006_v11, %v514_v58 }
  0x75   :  { %v1009_v9 = vrot.slane %v553_v20, 11  ;;  %v1010_v13 = vrot.slane %v554_v21, 11  ;;  %v576_v23 = vstv %s1322_s10  ;;  %v1343_v24 = vadd.f32 %v477_v5, %v1299_v12 }
  0x76   :  { %v1345_v25 = vadd.f32 %v478_v6, %v385_v53  ;;  %v551_v26 = vadd.f32 %v1007_v14, %v526_v16  ;;  %v552_v27 = vadd.f32 %v1008_v15, %v527_v17  ;;  %v577_v18 = vmul.f32 %v576_v23, %v1183_v0 }
  0x77   :  { %v563_v28 = vadd.f32 %v1009_v9, %v538_v22  ;;  %v578_v29 = vmul.f32 %v576_v23, %v1188_v1  ;;  %v581_v30 = vmul.f32 %v576_v23, %v1190_v2  ;;  %v585_v31 = vstv %s1329_s1 }
  0x78   :  { %v610_v32 = vstv %s1331_s11  ;;  %v564_v33 = vadd.f32 %v1010_v13, %v539_v19  ;;  %v582_v12 = vmul.f32 %v576_v23, %v1192_v3  ;;  %v586_v34 = vmul.f32 %v585_v31, %v1183_v0 }
  0x79   :  { %v587_v35 = vmul.f32 %v585_v31, %v1188_v1  ;;  %v598_v36 = vmul.f32 %v585_v31, %v1190_v2  ;;  %v599_v37 = vmul.f32 %v585_v31, %v1192_v3  ;;  %v611_v38 = vmul.f32 %v610_v32, %v1183_v0 }
  0x7a   :  { %v612_v39 = vmul.f32 %v610_v32, %v1188_v1  ;;  %v565_v40 = vmax.f32 %v551_v26, 0.0  ;;  %v567_v41 = vmax.f32 %v563_v28, 0.0  ;;  %v1011_v42 = vrot.slane %v586_v34, 9 }
  0x7b   :  { %v1012_v43 = vrot.slane %v587_v35, 9  ;;  %v1013_v44 = vrot.slane %v598_v36, 9  ;;  %v1014_v45 = vrot.slane %v599_v37, 9  ;;  %v1015_v46 = vrot.slane %v611_v38, 10 }
  0x7c   :  { %v1016_v47 = vrot.slane %v612_v39, 10  ;;  %v566_v48 = vmax.f32 %v552_v27, 0.0  ;;  %v596_v49 = vadd.f32 %v1011_v42, %v577_v18  ;;  %v635_v51 = vstv %s1339_s12 }
  0x7d   :  { %v597_v50 = vadd.f32 %v1012_v43, %v578_v29  ;;  %v608_v52 = vadd.f32 %v1013_v44, %v581_v30  ;;  %v609_v53 = vadd.f32 %v1014_v45, %v582_v12  ;;  %v623_v54 = vmul.f32 %v610_v32, %v1190_v2 }
  0x7e   :  { %v624_v55 = vmul.f32 %v610_v32, %v1192_v3  ;;  %v568_v56 = vmax.f32 %v564_v33, 0.0  ;;  %v569_v57 = vsub.f32 %v565_v40, %v567_v41  ;;  %v621_v58 = vadd.f32 %v1015_v46, %v596_v49 }
  0x7f   :  { %v622_v59 = vadd.f32 %v1016_v47, %v597_v50  ;;  %v1017_v60 = vrot.slane %v623_v54, 10  ;;  %v636_v62 = vmul.f32 %v635_v51, %v1183_v0  ;;  %v637_v63 = vmul.f32 %v635_v51, %v1188_v1 }
  0x80   :  { %v1018_v61 = vrot.slane %v624_v55, 10  ;;  %v571_v4 = vstv %s1354_s13  ;;  %v648_v5 = vmul.f32 %v635_v51, %v1190_v2  ;;  %v649_v6 = vmul.f32 %v635_v51, %v1192_v3 }
  0x81   :  { %v680_v7 = vstv %s1352_s3  ;;  %v633_v8 = vadd.f32 %v1017_v60, %v608_v52  ;;  %v1019_v11 = vrot.slane %v636_v62, 11  ;;  %v1020_v14 = vrot.slane %v637_v63, 11 }
  0x82   :  { %v634_v10 = vadd.f32 %v1018_v61, %v609_v53  ;;  %v1021_v15 = vrot.slane %v648_v5, 11  ;;  %v1022_v16 = vrot.slane %v649_v6, 11  ;;  %v666_v17 = vstv %s1365_s15 }
  0x83   :  { %v671_v20 = vstv %s1359_s14  ;;  %v570_v21 = vsub.f32 %v566_v48, %v568_v56  ;;  %v1382_v22 = vmul.f32 %v571_v4, %v569_v57  ;;  %v646_v19 = vadd.f32 %v1019_v11, %v621_v58 }
  0x84   :  { %v647_v9 = vadd.f32 %v1020_v14, %v622_v59  ;;  %v658_v13 = vadd.f32 %v1021_v15, %v633_v8  ;;  %v659_v23 = vadd.f32 %v1022_v16, %v634_v10  ;;  %v681_v26 = vmul.f32 %v680_v7, %v1183_v0 }
  0x85   :  { %v682_v27 = vmul.f32 %v680_v7, %v1188_v1  ;;  %v672_v28 = vmul.f32 %v671_v20, %v1183_v0  ;;  %v673_v18 = vmul.f32 %v671_v20, %v1188_v1  ;;  %v693_v29 = vmul.f32 %v680_v7, %v1190_v2 }
  0x86   :  { %v694_v30 = vmul.f32 %v680_v7, %v1192_v3  ;;  %v676_v31 = vmul.f32 %v671_v20, %v1190_v2  ;;  %v677_v32 = vmul.f32 %v671_v20, %v1192_v3  ;;  %v1023_v33 = vrot.slane %v681_v26, 9 }
  0x87   :  { %v1024_v12 = vrot.slane %v682_v27, 9  ;;  %v660_v34 = vmax.f32 %v646_v19, 0.0  ;;  %v1025_v35 = vrot.slane %v693_v29, 9  ;;  %v705_v37 = vstv %s1370_s16 }
  0x88   :  { %v1026_v36 = vrot.slane %v694_v30, 9  ;;  %v661_v38 = vmax.f32 %v647_v9, 0.0  ;;  %v662_v39 = vmax.f32 %v658_v13, 0.0  ;;  %v663_v40 = vmax.f32 %v659_v23, 0.0 }
  0x89   :  { %v730_v41 = vstv %s1374_s17  ;;  %v691_v42 = vadd.f32 %v1023_v33, %v672_v28  ;;  %v692_v43 = vadd.f32 %v1024_v12, %v673_v18  ;;  %v706_v44 = vmul.f32 %v705_v37, %v1183_v0 }
  0x8a   :  { %v707_v45 = vmul.f32 %v705_v37, %v1188_v1  ;;  %v703_v46 = vadd.f32 %v1025_v35, %v676_v31  ;;  %v704_v47 = vadd.f32 %v1026_v36, %v677_v32  ;;  %v718_v48 = vmul.f32 %v705_v37, %v1190_v2 }
  0x8b   :  { %v719_v49 = vmul.f32 %v705_v37, %v1192_v3  ;;  %v1027_v50 = vrot.slane %v706_v44, 10  ;;  %v731_v52 = vmul.f32 %v730_v41, %v1183_v0  ;;  %v732_v53 = vmul.f32 %v730_v41, %v1188_v1 }
  0x8c   :  { %v1028_v51 = vrot.slane %v707_v45, 10  ;;  %v573_v54 = vmul.f32 %v571_v4, %v570_v21  ;;  %v664_v55 = vsub.f32 %v660_v34, %v662_v39  ;;  %v1029_v56 = vrot.slane %v718_v48, 10 }
  0x8d   :  { %v1030_v57 = vrot.slane %v719_v49, 10  ;;  %v716_v58 = vadd.f32 %v1027_v50, %v691_v42  ;;  %v1031_v60 = vrot.slane %v731_v52, 11  ;;  %v1032_v61 = vrot.slane %v732_v53, 11 }
  0x8e   :  { %v717_v59 = vadd.f32 %v1028_v51, %v692_v43  ;;  %v728_v62 = vadd.f32 %v1029_v56, %v703_v46  ;;  %v743_v5 = vmul.f32 %v730_v41, %v1190_v2  ;;  %v744_v6 = vmul.f32 %v730_v41, %v1192_v3 }
  0x8f   :  { %v729_v63 = vadd.f32 %v1030_v57, %v704_v47  ;;  %v665_v7 = vsub.f32 %v661_v38, %v663_v40  ;;  %v741_v8 = vadd.f32 %v1031_v60, %v716_v58  ;;  %v766_v11 = vstv %s1392_s18 }
  0x90   :  { %v742_v10 = vadd.f32 %v1032_v61, %v717_v59  ;;  %v1033_v4 = vrot.slane %v743_v5, 11  ;;  %v1034_v14 = vrot.slane %v744_v6, 11  ;;  %v767_v15 = vmul.f32 %v766_v11, %v1183_v0 }
  0x91   :  { %v768_v16 = vmul.f32 %v766_v11, %v1188_v1  ;;  %v755_v20 = vmax.f32 %v741_v8, 0.0  ;;  %v771_v19 = vmul.f32 %v766_v11, %v1190_v2  ;;  %v772_v9 = vmul.f32 %v766_v11, %v1192_v3 }
  0x92   :  { %v756_v21 = vmax.f32 %v742_v10, 0.0  ;;  %v753_v13 = vadd.f32 %v1033_v4, %v728_v62  ;;  %v754_v23 = vadd.f32 %v1034_v14, %v729_v63  ;;  %v775_v26 = vstv %s1398_s19 }
  0x93   :  { %v800_v27 = vstv %s1400_s0  ;;  %v776_v28 = vmul.f32 %v775_v26, %v1183_v0  ;;  %v777_v18 = vmul.f32 %v775_v26, %v1188_v1  ;;  %v788_v29 = vmul.f32 %v775_v26, %v1190_v2 }
  0x94   :  { %v789_v30 = vmul.f32 %v775_v26, %v1192_v3  ;;  %v757_v31 = vmax.f32 %v753_v13, 0.0  ;;  %v758_v32 = vmax.f32 %v754_v23, 0.0  ;;  %v801_v33 = vmul.f32 %v800_v27, %v1183_v0 }
  0x95   :  { %v802_v12 = vmul.f32 %v800_v27, %v1188_v1  ;;  %v1035_v34 = vrot.slane %v776_v28, 9  ;;  %v1036_v35 = vrot.slane %v777_v18, 9  ;;  %v1037_v36 = vrot.slane %v788_v29, 9 }
  0x96   :  { %v1038_v37 = vrot.slane %v789_v30, 9  ;;  %v574_v38 = vadd.f32 %v1382_v22, %v1343_v24  ;;  %v575_v39 = vadd.f32 %v573_v54, %v1345_v25  ;;  %v1039_v40 = vrot.slane %v801_v33, 10 }
  0x97   :  { %v1040_v41 = vrot.slane %v802_v12, 10  ;;  %v667_v42 = vmul.f32 %v666_v17, %v664_v55  ;;  %v668_v43 = vmul.f32 %v666_v17, %v665_v7  ;;  %v786_v44 = vadd.f32 %v1035_v34, %v767_v15 }
  0x98   :  { %v787_v45 = vadd.f32 %v1036_v35, %v768_v16  ;;  %v798_v46 = vadd.f32 %v1037_v36, %v771_v19  ;;  %v799_v47 = vadd.f32 %v1038_v37, %v772_v9  ;;  %v813_v48 = vmul.f32 %v800_v27, %v1190_v2 }
  0x99   :  { %v814_v49 = vmul.f32 %v800_v27, %v1192_v3  ;;  %v759_v50 = vsub.f32 %v755_v20, %v757_v31  ;;  %v760_v51 = vsub.f32 %v756_v21, %v758_v32  ;;  %v761_v52 = vstv %s1413_s21 }
  0x9a   :  { %v825_v24 = vstv %s1411_s20  ;;  %v811_v25 = vadd.f32 %v1039_v40, %v786_v44  ;;  %v812_v22 = vadd.f32 %v1040_v41, %v787_v45  ;;  %v1041_v53 = vrot.slane %v813_v48, 10 }
  0x9b   :  { %v1042_v54 = vrot.slane %v814_v49, 10  ;;  %v826_v17 = vmul.f32 %v825_v24, %v1183_v0  ;;  %v827_v55 = vmul.f32 %v825_v24, %v1188_v1  ;;  %v838_v56 = vmul.f32 %v825_v24, %v1190_v2 }
  0x9c   :  { %v839_v57 = vmul.f32 %v825_v24, %v1192_v3  ;;  %v823_v58 = vadd.f32 %v1041_v53, %v798_v46  ;;  %v1135_v60 = vmov 1983009808   ;;  %v870_v62 = vlaneseq }
  0x9d   :  { %v824_v59 = vadd.f32 %v1042_v54, %v799_v47  ;;  %v868_v61 = vunpack.c.l.s4 %v1135_v60  ;;  %v1043_v63 = vrot.slane %v826_v17, 11  ;;  %v1044_v5 = vrot.slane %v827_v55, 11 }
  0x9e   :  { %v1045_v6 = vrot.slane %v838_v56, 11  ;;  %v1046_v7 = vrot.slane %v839_v57, 11  ;;  %v669_v8 = vadd.f32 %v667_v42, %v574_v38  ;;  %v670_v10 = vadd.f32 %v668_v43, %v575_v39 }
  0x9f   :  { %v762_v11 = vmul.f32 %v761_v52, %v759_v50  ;;  %v763_v0 = vmul.f32 %v761_v52, %v760_v51  ;;  %v836_v4 = vadd.f32 %v1043_v63, %v811_v25  ;;  %v837_v1 = vadd.f32 %v1044_v5, %v812_v22 }
  0xa0   :  { %v848_v14 = vadd.f32 %v1045_v6, %v823_v58  ;;  %v849_v2 = vadd.f32 %v1046_v7, %v824_v59  ;;  %v856_v21 = vstv %s1436_s22  ;;  %v869_v19 = vunpack.c.0.s8 %v868_v61 }
  0xa1   :  { %v850_v15 = vmax.f32 %v836_v4, 0.0  ;;  %v851_v3 = vmax.f32 %v837_v1, 0.0  ;;  %v871_v9 = vshrl.u32 %v870_v62, 7  ;;  %v764_v13 = vadd.f32 %v762_v11, %v669_v8 }
  0xa2   :  { %v852_v16 = vmax.f32 %v848_v14, 0.0  ;;  %v853_v20 = vmax.f32 %v849_v2, 0.0  ;;  %v765_v23 = vadd.f32 %v763_v0, %v670_v10 }
  0xa3   :  { %v872_v31 = vsub.s32 %v869_v19, %v871_v9 }
  0xa4   :  { %v854_v26 = vsub.f32 %v850_v15, %v852_v16  ;;  %v855_v27 = vsub.f32 %v851_v3, %v853_v20 }
  0xa6   :  { %v857_v28 = vmul.f32 %v856_v21, %v854_v26  ;;  %v858_v18 = vmul.f32 %v856_v21, %v855_v27 }
  0xa8   :  { %v859_v29 = vadd.f32 %v857_v28, %v764_v13  ;;  %v860_v30 = vadd.f32 %v858_v18, %v765_v23 }
  0xaa   :  { %v861_v32 = vmul.f32 %v859_v29, %v859_v29  ;;  %v862_v33 = vmul.f32 %v860_v30, %v860_v30 }
  0xac   :  { %v873_v12 = vrot.slane %v861_v32, %v872_v31  ;;  %v880_v34 = vrot.slane %v862_v33, %v872_v31 }
  0xae   :  { %v885_v35 = vrot.slane %v880_v34, 7 }
  0xb0   :  { %v887_v36 = vsel %vm886_vm0, %v885_v35, %v873_v12 }
  0xb1   :  { %v889_v37 = vsel %vm888_vm1, %v885_v35, %v887_v36 }
  0xb2   :  { %v891_v38 = vsel %vm890_vm2, %v885_v35, %v889_v37 }
  0xb3   :  { %v893_v39 = vsel %vm892_vm3, %v885_v35, %v891_v38 }
  0xb4   :  { %895 = vst [vmem:[#allocation9] sm:$0xf] %v893_v39 }
  0xb5   :  { %1111 = shalt.err (!%p1108_p8)
}
  0xb6   :  { %s1112_s2 = scalar_lea.hbm %s1459_s4, 64 }
  0xb7   :  { %p1113_p9 = scmp.ne.s32.totalorder %s1459_s4, %s1112_s2  ;;  %p1116_p10 = scmp.lt.u32.totalorder %s1112_s2, %s1459_s4 }
  0xb9   :  { %p1118_p11 = pnand %p1116_p10, %p1113_p9 }
  0xbb   :  { %1121 = shalt.err (!%p1118_p11)
}
  0xbc   :  { %905 = dma.vmem_to_hbm [thread:$0]  %s903_s24, 64, %s1459_s4, [#allocation4]  }
  0xbd   :  { %1128 = dma.done.wait [#allocation4], 64  }
  0xbe   :  { %1129 = vsyncadd [#allocation4], 4294967232 }
  0xbf   :  { %909 = vsyncpa [#allocation3], 1 }
  0xc0   :  { %910 = vsyncpa [#allocation4], 1 }
  0xc1   :  { %911 = vsyncpa [#allocation5], 1 }
  0xc2   :  { %912 = vsyncpa [#allocation8], 1 }

</bundles_post_ra>
